<compile_context>
chip_gen: v7x
topology: tpu7x:2x2x1
jax: 0.10.0
libtpu: 0.0.40
codegen_flags: <defaults>
</compile_context>

<pallas_src>
import jax
import jax.numpy as jnp
from jax.experimental import pallas as pl
from jax.experimental.pallas import tpu as pltpu


def _convt_vpu_kernel(x_ref, w_ref, b_ref, o_ref):
    # x_ref: (1, Cin, HW)   w_ref: (F, Cin)   b_ref: (F, 1)   o_ref: (1, F, HW)
    x = x_ref[0].astype(jnp.float32)        # (Cin, HW); HW (=256) is the lane dim
    w = w_ref[...].astype(jnp.float32)      # (F, Cin)
    cin = x.shape[0]
    f = w.shape[0]
    hw = x.shape[1]

    # Start from the bias, broadcast along lanes (lane-dense accumulator).
    acc = jnp.broadcast_to(b_ref[...].astype(jnp.float32), (f, hw))

    # Unrolled VPU broadcast-FMA over the tiny Cin contraction (no degenerate MXU
    # matmul): acc[f, p] += weight[ci, f] * x[ci, p].
    for ci in range(cin):
        acc = acc + w[:, ci:ci + 1] * x[ci:ci + 1, :]

    o_ref[0] = acc.astype(o_ref.dtype)      # (F, HW): unmasked 256-lane stores


def upsample_forward(x_nchw, weight, bias, *, kernel_size=2, stride=2, padding=0):
    """ConvTranspose2d forward (PyTorch semantics), K == stride, padding == 0.

    x_nchw : (N, Cin, H, W)
    weight : (Cin, Cout, K, K)   (PyTorch ConvTranspose2d weight layout)
    bias   : (Cout,)
    returns: (N, Cout, H*stride, W*stride)
    """
    assert kernel_size == stride and padding == 0, \
        "kernel implements the non-overlapping (K == stride, pad == 0) case"
    N, Cin, H, W = x_nchw.shape
    K = kernel_size
    Cout = weight.shape[1]
    F = Cout * K * K
    HW = H * W

    # Free view / tiny parameter reshapes (no HBM pass over activations).
    x3 = x_nchw.reshape(N, Cin, HW)                  # NCHW view, no transpose
    w_fc = weight.reshape(Cin, F).T                  # (F, Cin); rows ordered (co, kh, kw)
    b_f = jnp.repeat(bias, K * K).reshape(F, 1)      # (F, 1); bias per (co, kh, kw) row

    y = pl.pallas_call(
        _convt_vpu_kernel,
        out_shape=jax.ShapeDtypeStruct((N, F, HW), x_nchw.dtype),
        grid=(N,),
        in_specs=[
            pl.BlockSpec((1, Cin, HW), lambda n: (n, 0, 0)),
            pl.BlockSpec((F, Cin), lambda n: (0, 0)),   # constant index -> fetched once
            pl.BlockSpec((F, 1), lambda n: (0, 0)),     # constant index -> fetched once
        ],
        out_specs=pl.BlockSpec((1, F, HW), lambda n: (n, 0, 0)),
        compiler_params=pltpu.CompilerParams(
            dimension_semantics=("parallel",)),
    )(x3, w_fc, b_f)

    # Single fused scatter of the per-pixel (K, K, Cout) blocks into NCHW.
    y = y.reshape(N, Cout, K, K, H, W)                          # rows were (co, kh, kw)
    return jnp.transpose(y, (0, 1, 4, 2, 5, 3)).reshape(N, Cout, H * K, W * K)


def _reference(x_nchw, weight, bias, K, stride):
    # pure-JAX reference of ConvTranspose2d with K == stride, pad = 0
    N, Cin, H, W = x_nchw.shape
    Cout = weight.shape[1]
    x_nhwc = jnp.transpose(x_nchw, (0, 2, 3, 1))
    # ref[n,h,w,kh,kw,co] = sum_ci x[n,h,w,ci] * weight[ci,co,kh,kw]
    r = jnp.einsum('nhwc,coab->nhwabo', x_nhwc, weight) + bias
    r = jnp.transpose(r, (0, 1, 3, 2, 4, 5)).reshape(N, H * K, W * K, Cout)
    return jnp.transpose(r, (0, 3, 1, 2))


if __name__ == "__main__":
    key = jax.random.PRNGKey(0)
    k_x, k_w, k_b = jax.random.split(key, 3)

    # Module config: Upsample(in_channels=4, out_channels=4, kernel_size=2, stride=2, padding=0)
    N, Cin, H, W = 2, 4, 16, 16
    Cout, K, stride, padding = 4, 2, 2, 0

    # Deterministic parameter init (PyTorch-style uniform bound for ConvTranspose2d)
    bound = 1.0 / (Cin * K * K) ** 0.5
    weight = jax.random.uniform(k_w, (Cin, Cout, K, K),
                                minval=-bound, maxval=bound, dtype=jnp.float32)
    bias = jax.random.uniform(k_b, (Cout,), minval=-bound, maxval=bound,
                              dtype=jnp.float32)
    x = jax.random.normal(k_x, (N, Cin, H, W), dtype=jnp.float32)

    out = upsample_forward(x, weight, bias, kernel_size=K, stride=stride,
                           padding=padding)
    out = jax.block_until_ready(out)

    assert out.shape == (N, Cout, H * stride, W * stride), out.shape
    ref = _reference(x, weight, bias, K, stride)
    assert jnp.allclose(out, ref, atol=1e-5, rtol=1e-5)

    print("KERNEL_OK")
</pallas_src>

<mosaic_0001>
module attributes {stable_mosaic.version = 11 : i64} {
  func.func @_convt_vpu_kernel(%arg0: i32, %arg1: memref<1x4x256xf32, #tpu.memory_space<vmem>>, %arg2: memref<16x4xf32, #tpu.memory_space<vmem>>, %arg3: memref<16x1xf32, #tpu.memory_space<vmem>>, %arg4: memref<1x16x256xf32, #tpu.memory_space<vmem>>) attributes {dimension_semantics = [#tpu.dimension_semantics<parallel>], iteration_bounds = array<i64: 2>, scalar_prefetch = 0 : i64, scratch_operands = 0 : i64, tpu.core_type = #tpu.core_type<tc>, window_params = [{transform_indices = @transform_0, window_bounds = array<i64: 1, 4, 256>}, {pipeline_mode = #tpu.pipeline_mode<synchronous>, transform_indices = @transform_1, window_bounds = array<i64: 16, 4>}, {pipeline_mode = #tpu.pipeline_mode<synchronous>, transform_indices = @transform_2, window_bounds = array<i64: 16, 1>}, {transform_indices = @transform_3, window_bounds = array<i64: 1, 16, 256>}]} {
    %c0 = arith.constant 0 : index
    %c0_0 = arith.constant 0 : index
    %c0_1 = arith.constant 0 : index
    %0 = vector.load %arg1[%c0, %c0_0, %c0_1] : memref<1x4x256xf32, #tpu.memory_space<vmem>>, vector<1x4x256xf32>
    %1 = vector.shape_cast %0 : vector<1x4x256xf32> to vector<4x256xf32>
    %c0_2 = arith.constant 0 : index
    %c0_3 = arith.constant 0 : index
    %2 = vector.load %arg2[%c0_2, %c0_3] : memref<16x4xf32, #tpu.memory_space<vmem>>, vector<16x4xf32>
    %c0_4 = arith.constant 0 : index
    %c0_5 = arith.constant 0 : index
    %3 = vector.load %arg3[%c0_4, %c0_5] : memref<16x1xf32, #tpu.memory_space<vmem>>, vector<16x1xf32>
    %4 = vector.shape_cast %3 : vector<16x1xf32> to vector<16x1xf32>
    %5 = vector.broadcast %4 : vector<16x1xf32> to vector<16x256xf32>
    %6 = vector.extract_strided_slice %2 {offsets = [0, 0], sizes = [16, 1], strides = [1, 1]} : vector<16x4xf32> to vector<16x1xf32>
    %7 = vector.extract_strided_slice %1 {offsets = [0, 0], sizes = [1, 256], strides = [1, 1]} : vector<4x256xf32> to vector<1x256xf32>
    %8 = vector.broadcast %6 : vector<16x1xf32> to vector<16x256xf32>
    %9 = vector.broadcast %7 : vector<1x256xf32> to vector<16x256xf32>
    %10 = arith.mulf %8, %9 : vector<16x256xf32>
    %11 = arith.addf %5, %10 : vector<16x256xf32>
    %12 = vector.extract_strided_slice %2 {offsets = [0, 1], sizes = [16, 1], strides = [1, 1]} : vector<16x4xf32> to vector<16x1xf32>
    %13 = vector.extract_strided_slice %1 {offsets = [1, 0], sizes = [1, 256], strides = [1, 1]} : vector<4x256xf32> to vector<1x256xf32>
    %14 = vector.broadcast %12 : vector<16x1xf32> to vector<16x256xf32>
    %15 = vector.broadcast %13 : vector<1x256xf32> to vector<16x256xf32>
    %16 = arith.mulf %14, %15 : vector<16x256xf32>
    %17 = arith.addf %11, %16 : vector<16x256xf32>
    %18 = vector.extract_strided_slice %2 {offsets = [0, 2], sizes = [16, 1], strides = [1, 1]} : vector<16x4xf32> to vector<16x1xf32>
    %19 = vector.extract_strided_slice %1 {offsets = [2, 0], sizes = [1, 256], strides = [1, 1]} : vector<4x256xf32> to vector<1x256xf32>
    %20 = vector.broadcast %18 : vector<16x1xf32> to vector<16x256xf32>
    %21 = vector.broadcast %19 : vector<1x256xf32> to vector<16x256xf32>
    %22 = arith.mulf %20, %21 : vector<16x256xf32>
    %23 = arith.addf %17, %22 : vector<16x256xf32>
    %24 = vector.extract_strided_slice %2 {offsets = [0, 3], sizes = [16, 1], strides = [1, 1]} : vector<16x4xf32> to vector<16x1xf32>
    %25 = vector.extract_strided_slice %1 {offsets = [3, 0], sizes = [1, 256], strides = [1, 1]} : vector<4x256xf32> to vector<1x256xf32>
    %26 = vector.broadcast %24 : vector<16x1xf32> to vector<16x256xf32>
    %27 = vector.broadcast %25 : vector<1x256xf32> to vector<16x256xf32>
    %28 = arith.mulf %26, %27 : vector<16x256xf32>
    %29 = arith.addf %23, %28 : vector<16x256xf32>
    %c0_6 = arith.constant 0 : index
    %c0_7 = arith.constant 0 : index
    %c0_8 = arith.constant 0 : index
    %30 = vector.load %arg4[%c0_6, %c0_7, %c0_8] : memref<1x16x256xf32, #tpu.memory_space<vmem>>, vector<1x16x256xf32>
    %31 = vector.shape_cast %30 : vector<1x16x256xf32> to vector<16x256xf32>
    %32 = vector.shape_cast %29 : vector<16x256xf32> to vector<1x16x256xf32>
    tpu.vector_store %arg4[%c0_6, %c0_7, %c0_8], %32 {strides = array<i32>} : memref<1x16x256xf32, #tpu.memory_space<vmem>>, vector<1x16x256xf32>,
    return
  }
  func.func @transform_0(%arg0: i32) -> (i32, i32, i32) {
    %c0_i32 = arith.constant 0 : i32
    %c0_i32_0 = arith.constant 0 : i32
    %c0_i32_1 = arith.constant 0 : i32
    return %arg0, %c0_i32, %c0_i32_0 : i32, i32, i32
  }
  func.func @transform_1(%arg0: i32) -> (i32, i32) {
    %c0_i32 = arith.constant 0 : i32
    %c0_i32_0 = arith.constant 0 : i32
    %c0_i32_1 = arith.constant 0 : i32
    return %c0_i32, %c0_i32_0 : i32, i32
  }
  func.func @transform_2(%arg0: i32) -> (i32, i32) {
    %c0_i32 = arith.constant 0 : i32
    %c0_i32_0 = arith.constant 0 : i32
    %c0_i32_1 = arith.constant 0 : i32
    return %c0_i32, %c0_i32_0 : i32, i32
  }
  func.func @transform_3(%arg0: i32) -> (i32, i32, i32) {
    %c0_i32 = arith.constant 0 : i32
    %c0_i32_0 = arith.constant 0 : i32
    %c0_i32_1 = arith.constant 0 : i32
    return %arg0, %c0_i32, %c0_i32_0 : i32, i32, i32
  }
}

</mosaic_0001>

<bundles_post_ra>
// kernel: tpu_custom_call.1
= control target key start
LH: loop header
LB: loop body
LE: loop exit
PB: predicated region body
PF: predicated region fallthrough
CT: control target
= control target key end

     0   :  { %8 = vsyncpa [#allocation3], 0  ;;  %s680_s0 = inlined_call_operand.vmem [shape: f32[2,4,256], index: 0, kind: input, shape index: {}]   ;;  %s681_s1 = inlined_call_operand.vmem [shape: f32[16,4], index: 1, kind: input, shape index: {}]   ;;  %s682_s2 = inlined_call_operand.vmem [shape: f32[16,1], index: 2, kind: input, shape index: {}]   ;;  %s683_s3 = inlined_call_operand.hbm [shape: f32[2,16,256], index: 3, kind: output, shape index: {}]  }
   0x1   :  { %10 = vsyncpa [#allocation3 + $0x1], 0  ;;  %s561_s12 = smov 0   ;;  %s563_s13 = smov 0  }
   0x2   :  { %s565_s14 = smov 0   ;;  %s567_s15 = smov 0  }
   0x3 LB: > { %s582_s16 = sadd.s32 4294967295, %s532_s15   ;;  %s403_s17 = sadd.s32 4294967294, %s532_s15   ;;  %s532_s15 = sphi %s567_s15, %s689_s15   ;;  %s528_s14 = sphi %s565_s14, %s688_s14   ;;  %s524_s13 = sphi %s563_s13, %s687_s13   ;;  %s520_s12 = sphi %s561_s12, %s686_s12  }
   0x4   : > { %s586_s18 = sadd.s32 1, %s532_s15   ;;  %s91_s19 = sadd.s32 1, %s528_s14 }
   0x5   : > { %s88_s20 = ssub.s32 %s532_s15, %s586_s18  ;;  %p101_p0 = scmp.ne.s32.totalorder %s528_s14, %s524_s13 }
   0x6   : > { %p89_p1 = scmp.eq.s32.totalorder %s88_s20, 0  ;;  %p102_p2 = scmp.eq.s32.totalorder %s582_s16, 1 }
   0x7   : > { %p107_p3 = scmp.ne.s32.totalorder %s524_s13, %s520_s12  ;;  %p108_p4 = scmp.eq.s32.totalorder %s403_s17, 1 }
   0x8   : > { %s597_s21 = scalar_select %p89_p1, %s528_s14, %s91_s19  }
   0x9   : > { %p599_p5 = por %p102_p2, %p101_p0  ;;  %p603_p6 = por %p108_p4, %p107_p3 }
   0xa   : > { %p406_p7 = scmp.ge.s32.totalorder %s532_s15, 1  ;;  %p140_p8 = scmp.lt.s32.totalorder %s532_s15, 3 }
   0xc   : > { %p141_p9 = pnand %p406_p7, %p140_p8 }
   0xd   : > { %v172_v0 = vld [vmem:[%s682_s2] sm:$0xff] (!%p141_p9)  ;;  %v534_v2 = vmov (!%p141_p9), 0   ;;  %v173_v3 = vld [vmem:[%s682_s2 + $0x8] sm:$0xff] (!%p141_p9)  ;;  %v535_v5 = vmov (!%p141_p9), 1   ;;  %v536_v6 = vmov (!%p141_p9), 2   ;;  %v537_v7 = vmov (!%p141_p9), 3  }
   0xe   : > { %144 = sbr.rel (%p141_p9) target bundleno = 185 (0xb9), region = 32  ;;  %v170_v1 = vld [vmem:[%s681_s1] sm:$0xff] (!%p141_p9)  ;;  %463 = vset.pattern.permute.xlu1 (!%p141_p9), %v534_v2  ;;  %462 = vset.pattern.permute.xlu0 (!%p141_p9), %v534_v2  ;;  %v171_v4 = vld [vmem:[%s681_s1 + $0x8] sm:$0xff] (!%p141_p9)  ;;  %p164_p10 = scmp.lt.s32.totalorder (!%p141_p9), %s582_s16, 1  ;;  %v195_v8 = vlaneseq (!%p141_p9) }
   0xf   : > { %176 = vperm.xlu1 (!%p141_p9), %463, %v172_v0   ;;  %186 = vperm.xlu0 (!%p141_p9), %462, %v170_v1   ;;  %s161_s10 = sand.u32 (!%p141_p9), 1, %s524_s13   ;;  %s416_s20 = sshll.u32 (!%p141_p9), %s582_s16, 9 }
  0x10   : > { %v196_v9 = vshrl.u32 (!%p141_p9), %v195_v8, 7  ;;  %s407_s11 = sshll.u32 (!%p141_p9), %s161_s10, 5  ;;  %s635_s26 = scalar_lea.hbm (!%p141_p9), %s683_s3, %s416_s20 }
  0x11   : > { %s163_s17 = scalar_lea.vmem (!%p141_p9), [#allocation2], %s407_s11  ;;  %s538_s28 = smov (!%p141_p9), [#allocation2]  }
  0x12   : > { %v197_v11 = vsub.s32 (!%p141_p9), 0, %v196_v9  ;;  %v201_v12 = vsub.s32 (!%p141_p9), 4, %v196_v9  ;;  %v231_v15 = vsub.s32 (!%p141_p9), 1, %v196_v9  ;;  %v235_v16 = vsub.s32 (!%p141_p9), 5, %v196_v9  ;;  %s341_s19 = sshll.u32 (!%p141_p9), %s163_s17, 4  ;;  %s474_s29 = sshll.u32 (!%p141_p9), %s538_s28, 4  ;;  %s630_s19 = int_to_ptr.vmem [resolvable:$true] %s341_s19  ;;  %s475_s29 = int_to_ptr.vmem [resolvable:$false] %s474_s29 }
  0x13   : > { %181 = vperm.xlu1 (!%p141_p9), %463, %v173_v3   ;;  %191 = vperm.xlu0 (!%p141_p9), %462, %v171_v4   ;;  %v265_v21 = vsub.s32 (!%p141_p9), 2, %v196_v9  ;;  %v269_v22 = vsub.s32 (!%p141_p9), 6, %v196_v9  ;;  %v299_v25 = vsub.s32 (!%p141_p9), 3, %v196_v9  ;;  %v303_v26 = vsub.s32 (!%p141_p9), 7, %v196_v9  ;;  %s470_s27 = scalar_lea.vmem (!%p141_p9), %s630_s19, 512  ;;  %s476_s30 = scalar_lea.vmem (!%p141_p9), %s475_s29, 1024 }
  0x14   : > { %p471_p11 = scmp.ne.s32.totalorder (!%p141_p9), %s630_s19, %s470_s27  ;;  %p477_p0 = scmp.lt.s32.totalorder (!%p141_p9), %s630_s19, %s475_s29 }
  0x15   : > { %s165_s5 = scalar_select %p164_p10, %s582_s16, 1 }
  0x16   : > { %s639_s16 = scalar_lea.sflag [#allocation3], %s161_s10  ;;  %p472_p12 = pnand %p471_p11, %p599_p5 }
  0x17   : > { %465 = vset.pattern.permute.xlu1 %v535_v5  ;;  %464 = vset.pattern.permute.xlu0 %v535_v5  ;;  %s415_s6 = sshll.u32 %s165_s5, 3  ;;  %p478_p1 = scmp.lt.s32.totalorder %s476_s30, %s470_s27 }
  0x18   : > { %226 = vperm.xlu1 %465, %v171_v4   ;;  %222 = vperm.xlu0 %464, %v170_v1   ;;  %s168_s9 = scalar_lea.vmem %s680_s0, %s415_s6  ;;  %p473_p13 = pneg %p472_p12 }
  0x19   : > { %v169_v14 = vld [vmem:[%s168_s9] sm:$0xff]  ;;  %p479_p2 = por %p478_p1, %p477_p0 }
  0x1a   : > { %v198_v17 = vrot.slane %v169_v14, %v197_v11  ;;  %v202_v18 = vrot.slane %v169_v14, %v201_v12  ;;  %v232_v23 = vrot.slane %v169_v14, %v231_v15  ;;  %v236_v24 = vrot.slane %v169_v14, %v235_v16 }
  0x1b   : > { %v266_v29 = vrot.slane %v169_v14, %v265_v21  ;;  %v270_v30 = vrot.slane %v169_v14, %v269_v22  ;;  %v300_v35 = vrot.slane %v169_v14, %v299_v25  ;;  %v304_v36 = vrot.slane %v169_v14, %v303_v26  ;;  %p480_p3 = pnand %p479_p2, %p473_p13 }
  0x1c   : > { %466 = vset.pattern.permute.xlu1 %v536_v6  ;;  %467 = vset.pattern.permute.xlu0 %v536_v6  ;;  %v208_v27 = vrot.slane %v198_v17, %v197_v11  ;;  %v212_v28 = vrot.slane %v202_v18, %v197_v11  ;;  %v242_v32 = vrot.slane %v232_v23, %v231_v15 }
  0x1d   : > { %256 = vperm.xlu1 %466, %v170_v1   ;;  %260 = vperm.xlu0 %467, %v171_v4   ;;  %v246_v33 = vrot.slane %v236_v24, %v231_v15  ;;  %v276_v39 = vrot.slane %v266_v29, %v265_v21  ;;  %v280_v40 = vrot.slane %v270_v30, %v265_v21 }
  0x1e   : > { %v310_v46 = vrot.slane %v300_v35, %v299_v25  ;;  %v314_v47 = vrot.slane %v304_v36, %v299_v25 }
  0x21   : > { %468 = vset.pattern.permute.xlu1 %v537_v7  ;;  %469 = vset.pattern.permute.xlu0 %v537_v7 }
  0x22   : > { %290 = vperm.xlu1 %468, %v170_v1  }
  0x26   : > { %294 = vperm.xlu1 %468, %v171_v4  }
  0x8e   : > { %v177_v10 = vpop.permute.xlu1 %176  ;;  %v187_v13 = vpop.permute.xlu0 %186 }
  0x8f   : > { %v213_v37 = vmul.f32 %v208_v27, %v187_v13  ;;  %v214_v38 = vmul.f32 %v212_v28, %v187_v13 }
  0x91   : > { %v217_v48 = vadd.f32 %v213_v37, %v177_v10  ;;  %v218_v49 = vadd.f32 %v214_v38, %v177_v10 }
  0x92   : > { %v182_v19 = vpop.permute.xlu1 %181  ;;  %v192_v20 = vpop.permute.xlu0 %191 }
  0x93   : > { %v215_v44 = vmul.f32 %v208_v27, %v192_v20  ;;  %v216_v45 = vmul.f32 %v212_v28, %v192_v20 }
  0x95   : > { %v219_v57 = vadd.f32 %v215_v44, %v182_v19  ;;  %v220_v58 = vadd.f32 %v216_v45, %v182_v19 }
  0x97   : > { %v227_v31 = vpop.permute.xlu1 %226  ;;  %v223_v34 = vpop.permute.xlu0 %222 }
  0x98   : > { %v247_v41 = vmul.f32 %v242_v32, %v223_v34  ;;  %v248_v42 = vmul.f32 %v246_v33, %v223_v34  ;;  %v249_v53 = vmul.f32 %v242_v32, %v227_v31  ;;  %v250_v54 = vmul.f32 %v246_v33, %v227_v31 }
  0x9a   : > { %v251_v55 = vadd.f32 %v247_v41, %v217_v48  ;;  %v252_v56 = vadd.f32 %v248_v42, %v218_v49  ;;  %v253_v2 = vadd.f32 %v249_v53, %v219_v57  ;;  %v254_v3 = vadd.f32 %v250_v54, %v220_v58 }
  0x9c   : > { %v257_v43 = vpop.permute.xlu1 %256  ;;  %v261_v52 = vpop.permute.xlu0 %260 }
  0x9d   : > { %v281_v50 = vmul.f32 %v276_v39, %v257_v43  ;;  %v282_v51 = vmul.f32 %v280_v40, %v257_v43  ;;  %v283_v59 = vmul.f32 %v276_v39, %v261_v52  ;;  %v284_v60 = vmul.f32 %v280_v40, %v261_v52 }
  0x9f   : > { %v285_v62 = vadd.f32 %v281_v50, %v251_v55  ;;  %v286_v63 = vadd.f32 %v282_v51, %v252_v56  ;;  %v287_v7 = vadd.f32 %v283_v59, %v253_v2  ;;  %v288_v8 = vadd.f32 %v284_v60, %v254_v3 }
  0xa1   : > { %v291_v61 = vpop.permute.xlu1 %290 }
  0xa2   : > { %v315_v0 = vmul.f32 %v310_v46, %v291_v61  ;;  %v316_v1 = vmul.f32 %v314_v47, %v291_v61 }
  0xa4   : > { %v319_v4 = vadd.f32 %v315_v0, %v285_v62  ;;  %v320_v5 = vadd.f32 %v316_v1, %v286_v63 }
  0xa5   : > { %v295_v6 = vpop.permute.xlu1 %294 }
  0xa6   : > { %323 = vst [vmem:[%s163_s17] sm:$0xff] %v319_v4  ;;  %324 = vst [vmem:[%s163_s17 + $0x8] sm:$0xff] %v320_v5  ;;  %v317_v9 = vmul.f32 %v310_v46, %v295_v6  ;;  %v318_v10 = vmul.f32 %v314_v47, %v295_v6 }
  0xa8   : > { %v321_v11 = vadd.f32 %v317_v9, %v287_v7  ;;  %v322_v12 = vadd.f32 %v318_v10, %v288_v8 }
  0xaa   : > { %325 = vst [vmem:[%s163_s17 + $0x10] sm:$0xff] %v321_v11  ;;  %326 = vst [vmem:[%s163_s17 + $0x18] sm:$0xff] %v322_v12 }
  0xab   : > { %483 = shalt.err (!%p480_p3)
}
  0xac   : > { %s484_s4 = scalar_lea.hbm %s635_s26, 512  ;;  %s488_s7 = scalar_lea.hbm %s683_s3, 1024 }
  0xad   : > { %p485_p4 = scmp.ne.s32.totalorder %s635_s26, %s484_s4  ;;  %p489_p9 = scmp.lt.u32.totalorder %s635_s26, %s683_s3 }
  0xae   : > { %p490_p10 = scmp.lt.u32.totalorder %s488_s7, %s484_s4  ;;  %p492_p12 = scmp.lt.u32.totalorder %s484_s4, %s635_s26 }
  0xaf   : > { %p486_p7 = pnand %p485_p4, %p599_p5 }
  0xb0   : > { %p491_p11 = por %p490_p10, %p489_p9 }
  0xb1   : > { %p487_p8 = pneg %p486_p7 }
  0xb2   : > { %p493_p13 = por %p492_p12, %p491_p11 }
  0xb4   : > { %p494_p0 = pnand %p493_p13, %p487_p8 }
  0xb6   : > { %497 = shalt.err (!%p494_p0)
}
  0xb7   : > { %s539_s10 = smov 256   ;;  %s540_s11 = smov 16  }
  0xb8   : > { %417 = dma.vmem_to_hbm [thread:$0]  (%p599_p5), %s630_s19, 512, %s635_s26, %s639_s16, %s539_s10, %s539_s10, %s540_s11  }
  0xb9 PF: > { %p423_p1 = scmp.ge.s32.totalorder %s532_s15, 2  ;;  %s356_s17 = sand.u32 1, %s520_s12  }
  0xba   : > { %s357_s20 = scalar_lea.sflag [#allocation3], %s356_s17 }
  0xbb   : > { %p420_p2 = pnand %p423_p1, %p603_p6 }
  0xbd   : > { %515 = dma.done.wait (!%p420_p2), %s357_s20, 512  }
  0xbe   : > { %517 = vsyncadd (!%p420_p2), %s357_s20, 4294966784  ;;  %p13_p3 = scmp.ge.s32.totalorder %s586_s18, 4   ;;  %s686_s12 = smov %s524_s13 }
  0xbf   : > { %s687_s13 = smov %s528_s14  ;;  %s688_s14 = smov %s597_s21 }
  0xc0   : > { %s689_s15 = smov %s586_s18  ;;  %15 = sbr.rel (!%p13_p3) target bundleno = 3 (0x3), region = 67 }
  0xc7   :  { %362 = vsyncpa [#allocation3], 1 }
  0xc8   :  { %364 = vsyncpa [#allocation3 + $0x1], 1 }

</bundles_post_ra>
